<compile_context>
chip_gen: v7x
topology: tpu7x:2x2x1
jax: 0.10.0
libtpu: 0.0.40
codegen_flags: <defaults>
</compile_context>

<pallas_src>
import functools

import jax
import jax.numpy as jnp
from jax.experimental import pallas as pl
from jax.experimental.pallas import tpu as pltpu

LANE = 128
SUBLANE = 8


def _round_up(x, m):
    return (x + m - 1) // m * m


def _mlp_kernel(x_ref, w1_ref, b1_ref, w2_ref, b2_ref, w3_ref, b3_ref, o_ref):
    # ---- Layer 1: K = input_size (3) is tiny -> VPU broadcast FMAs, not the MXU.
    x = x_ref[...]                                    # (bb, in)   f32
    w1 = w1_ref[...]                                  # (in, H1P)  f32 (VPU-only weight)
    in_size = x.shape[1]
    acc = x[:, 0:1] * w1[0:1, :]                      # init with first FMA (no zeros pass)
    for k in range(1, in_size - 1):                   # static trip count -> unrolled
        acc = acc + x[:, k:k + 1] * w1[k:k + 1, :]
    if in_size > 1:                                   # fold the bias into the last add
        k = in_size - 1
        acc = acc + x[:, k:k + 1] * w1[k:k + 1, :] + b1_ref[...]
    else:
        acc = acc + b1_ref[...]
    h1 = jnp.maximum(acc, 0.0)                        # (bb, H1P) f32

    # ---- Layer 2: (bb, 512) @ (512, 256) on the MXU, compute_dtype operands / f32 acc.
    h2 = jnp.dot(h1.astype(w2_ref.dtype), w2_ref[...],
                 preferred_element_type=jnp.float32) + b2_ref[...]
    h2 = jnp.maximum(h2, 0.0)

    # ---- Layer 3: (bb, 256) @ (256, 128) on the MXU; lane-slice to the real 3 outputs
    # in-register, then store the unpadded (bb, 3) block.
    out_full = jnp.dot(h2.astype(w3_ref.dtype), w3_ref[...],
                       preferred_element_type=jnp.float32)        # (bb, 128)
    n_out = o_ref.shape[1]                                        # 3 (static)
    o_ref[...] = (out_full[:, :n_out] + b3_ref[...]).astype(o_ref.dtype)


@functools.partial(jax.jit, static_argnames=("block_b",))
def _mult_alpha_padded(x, w1p, b1p, w2p, b2p, w3p, b3p, *, block_b):
    """x: (B, in) f32; w*/b* already padded/cast by make_mult_alpha()."""
    B, in_size = x.shape
    out_size = b3p.shape[1]                      # unpadded (3)
    grid = (pl.cdiv(B, block_b),)

    resident = lambda i: (0, 0)                  # weights/biases: same block every step
    wspec = lambda a: pl.BlockSpec(a.shape, resident, pipeline_mode=pl.Buffered(1))

    # FLOPs from the padded dims (what the VPU/MXU actually execute); bytes unpadded out.
    rows = grid[0] * block_b
    flops = 2 * rows * (in_size * w1p.shape[1]
                        + w2p.shape[0] * w2p.shape[1]
                        + w3p.shape[0] * w3p.shape[1])
    bytes_accessed = (x.size * x.dtype.itemsize
                      + sum(a.size * a.dtype.itemsize
                            for a in (w1p, b1p, w2p, b2p, w3p, b3p))
                      + B * out_size * 4)

    return pl.pallas_call(
        _mlp_kernel,
        out_shape=jax.ShapeDtypeStruct((B, out_size), jnp.float32),
        grid_spec=pltpu.PrefetchScalarGridSpec(
            num_scalar_prefetch=0,
            grid=grid,
            in_specs=[
                pl.BlockSpec((block_b, in_size), lambda i: (i, 0)),   # x batch tile
                wspec(w1p), wspec(b1p),
                wspec(w2p), wspec(b2p),
                wspec(w3p), wspec(b3p),
            ],
            # Unpadded, contiguous (block_b, 3) output block: no write amplification,
            # no post-kernel slice copy.
            out_specs=pl.BlockSpec((block_b, out_size), lambda i: (i, 0)),
        ),
        compiler_params=pltpu.CompilerParams(
            dimension_semantics=("parallel",),          # megacore / v7x 2-TC sharding
            vmem_limit_bytes=32 * 1024 * 1024,          # safe on v5e/v6e/v7x; peak ~14 MiB
        ),
        cost_estimate=pl.CostEstimate(
            flops=flops, transcendentals=0, bytes_accessed=bytes_accessed),
    )(x, w1p, b1p, w2p, b2p, w3p, b3p)


def _default_block_b(B):
    cap = 2048                                   # v6e / v7x: amortize per-step overhead
    try:
        kind = jax.devices()[0].device_kind.lower()
        if "v5 lite" in kind or "v5e" in kind or "v5lite" in kind:
            cap = 1024                           # v5e is compute-bound already at 512-1024
    except Exception:
        pass
    return min(_round_up(max(B, 1), SUBLANE), cap)


def make_mult_alpha(w1, b1, w2, b2, w3, b3, compute_dtype=jnp.bfloat16):
    """Pad/cast the parameters ONCE and return a fast forward closure.

    w*: (fan_in, fan_out) f32 (pre-transposed vs. torch); b*: (1, fan_out) f32.
    Zero-padding of both weights and biases keeps padded channels exactly 0 through
    ReLU, so real outputs are exact.
    """
    h1p = _round_up(w1.shape[1], LANE)           # 500 -> 512
    h2p = _round_up(w2.shape[1], LANE)           # 250 -> 256
    n3p = _round_up(w3.shape[1], LANE)           # 3   -> 128 (MXU tile width only)

    w1p = jnp.pad(w1, ((0, 0), (0, h1p - w1.shape[1])))              # stays f32 (VPU path)
    b1p = jnp.pad(b1, ((0, 0), (0, h1p - b1.shape[1])))
    w2p = jnp.pad(w2, ((0, h1p - w2.shape[0]),
                       (0, h2p - w2.shape[1]))).astype(compute_dtype)
    b2p = jnp.pad(b2, ((0, 0), (0, h2p - b2.shape[1])))
    w3p = jnp.pad(w3, ((0, h2p - w3.shape[0]),
                       (0, n3p - w3.shape[1]))).astype(compute_dtype)
    b3p = b3                                                          # unpadded (1, 3)
    params = tuple(jax.device_put(a) for a in (w1p, b1p, w2p, b2p, w3p, b3p))

    def forward(x, block_b=None):
        B = x.shape[0]
        if block_b is None:
            block_b = _default_block_b(B)
        block_b = min(block_b, _round_up(B, SUBLANE))   # never larger than the batch
        return _mult_alpha_padded(x, *params, block_b=block_b)

    return forward


def _init_linear(key, fan_in, fan_out):
    """torch.nn.Linear-style init: U(-1/sqrt(fan_in), +1/sqrt(fan_in)).
    W returned pre-transposed as (fan_in, fan_out); b as (1, fan_out)."""
    kw, kb = jax.random.split(key)
    bound = 1.0 / jnp.sqrt(jnp.float32(fan_in))
    w = jax.random.uniform(kw, (fan_in, fan_out), jnp.float32, -bound, bound)
    b = jax.random.uniform(kb, (1, fan_out), jnp.float32, -bound, bound)
    return w, b


def _ref_matched(x, w1, b1, w2, b2, w3, b3, cd):
    """Pure-JAX reference matching the kernel numerics (f32 layer 1, cd MXU operands)."""
    h1 = jnp.maximum((x[:, :, None] * w1[None, :, :]).sum(axis=1) + b1, 0.0)
    h2 = jnp.maximum(jnp.dot(h1.astype(cd), w2.astype(cd),
                             preferred_element_type=jnp.float32) + b2, 0.0)
    return jnp.dot(h2.astype(cd), w3.astype(cd),
                   preferred_element_type=jnp.float32) + b3


if __name__ == "__main__":
    input_size, hidden_1, hidden_2, output_size = 3, 500, 250, 3
    batch = 8

    key = jax.random.PRNGKey(0)
    kx, k1, k2, k3, kx2 = jax.random.split(key, 5)

    x = jax.random.normal(kx, (batch, input_size), jnp.float32)
    w1, b1 = _init_linear(k1, input_size, hidden_1)
    w2, b2 = _init_linear(k2, hidden_1, hidden_2)
    w3, b3 = _init_linear(k3, hidden_2, output_size)

    # Full-f32 reference (matches the torch module exactly).
    h1 = jnp.maximum(x @ w1 + b1, 0.0)
    h2 = jnp.maximum(h1 @ w2 + b2, 0.0)
    ref_f32 = h2 @ w3 + b3

    # 1) Default (bf16 MXU operands, f32 accumulation) path.
    fwd_bf = make_mult_alpha(w1, b1, w2, b2, w3, b3)
    out_bf = jax.block_until_ready(fwd_bf(x))
    assert out_bf.shape == (batch, output_size)
    ref_bf = _ref_matched(x, w1, b1, w2, b2, w3, b3, jnp.bfloat16)
    assert jnp.allclose(out_bf, ref_bf, atol=1e-3, rtol=1e-3)
    assert jnp.allclose(out_bf, ref_f32, atol=5e-2, rtol=5e-2)   # loose sanity vs f32

    # 2) Pure-f32 path (compute_dtype override) — tight match to the f32 reference.
    fwd_f32 = make_mult_alpha(w1, b1, w2, b2, w3, b3, compute_dtype=jnp.float32)
    out_f32 = jax.block_until_ready(fwd_f32(x))
    assert jnp.allclose(out_f32, ref_f32, atol=2e-3, rtol=2e-3)

    # 3) Multi-step grid + ragged tail: B=136 with block_b=64 -> grid of 3, 8-row tail.
    x2 = jax.random.normal(kx2, (136, input_size), jnp.float32)
    out2 = jax.block_until_ready(fwd_bf(x2, block_b=64))
    ref2 = _ref_matched(x2, w1, b1, w2, b2, w3, b3, jnp.bfloat16)
    assert out2.shape == (136, output_size)
    assert jnp.allclose(out2, ref2, atol=1e-3, rtol=1e-3)

    # TODO(synk): compute_l1_loss is a standalone static helper (sum(|w|)), not part of
    # the forward pass, so it is not implemented as a Pallas kernel.
    print("KERNEL_OK")
</pallas_src>

<mosaic_0001>
module attributes {stable_mosaic.version = 11 : i64} {
  func.func @_mlp_kernel(%arg0: i32, %arg1: memref<8x3xf32, #tpu.memory_space<vmem>>, %arg2: memref<3x512xf32, #tpu.memory_space<vmem>>, %arg3: memref<1x512xf32, #tpu.memory_space<vmem>>, %arg4: memref<512x256xbf16, #tpu.memory_space<vmem>>, %arg5: memref<1x256xf32, #tpu.memory_space<vmem>>, %arg6: memref<256x128xbf16, #tpu.memory_space<vmem>>, %arg7: memref<1x3xf32, #tpu.memory_space<vmem>>, %arg8: memref<8x3xf32, #tpu.memory_space<vmem>>) attributes {dimension_semantics = [#tpu.dimension_semantics<parallel>], iteration_bounds = array<i64: 1>, scalar_prefetch = 0 : i64, scratch_operands = 0 : i64, tpu.core_type = #tpu.core_type<tc>, window_params = [{transform_indices = @transform_0, window_bounds = array<i64: 8, 3>}, {pipeline_mode = #tpu.pipeline_mode<synchronous>, transform_indices = @transform_1, window_bounds = array<i64: 3, 512>}, {pipeline_mode = #tpu.pipeline_mode<synchronous>, transform_indices = @transform_2, window_bounds = array<i64: 1, 512>}, {pipeline_mode = #tpu.pipeline_mode<synchronous>, transform_indices = @transform_3, window_bounds = array<i64: 512, 256>}, {pipeline_mode = #tpu.pipeline_mode<synchronous>, transform_indices = @transform_4, window_bounds = array<i64: 1, 256>}, {pipeline_mode = #tpu.pipeline_mode<synchronous>, transform_indices = @transform_5, window_bounds = array<i64: 256, 128>}, {pipeline_mode = #tpu.pipeline_mode<synchronous>, transform_indices = @transform_6, window_bounds = array<i64: 1, 3>}, {transform_indices = @transform_7, window_bounds = array<i64: 8, 3>}]} {
    %c0 = arith.constant 0 : index
    %c0_0 = arith.constant 0 : index
    %0 = vector.load %arg1[%c0, %c0_0] : memref<8x3xf32, #tpu.memory_space<vmem>>, vector<8x3xf32>
    %c0_1 = arith.constant 0 : index
    %c0_2 = arith.constant 0 : index
    %1 = vector.load %arg2[%c0_1, %c0_2] : memref<3x512xf32, #tpu.memory_space<vmem>>, vector<3x512xf32>
    %2 = vector.extract_strided_slice %0 {offsets = [0, 0], sizes = [8, 1], strides = [1, 1]} : vector<8x3xf32> to vector<8x1xf32>
    %3 = vector.extract_strided_slice %1 {offsets = [0, 0], sizes = [1, 512], strides = [1, 1]} : vector<3x512xf32> to vector<1x512xf32>
    %4 = vector.broadcast %2 : vector<8x1xf32> to vector<8x512xf32>
    %5 = vector.broadcast %3 : vector<1x512xf32> to vector<8x512xf32>
    %6 = arith.mulf %4, %5 : vector<8x512xf32>
    %7 = vector.extract_strided_slice %0 {offsets = [0, 1], sizes = [8, 1], strides = [1, 1]} : vector<8x3xf32> to vector<8x1xf32>
    %8 = vector.extract_strided_slice %1 {offsets = [1, 0], sizes = [1, 512], strides = [1, 1]} : vector<3x512xf32> to vector<1x512xf32>
    %9 = vector.broadcast %7 : vector<8x1xf32> to vector<8x512xf32>
    %10 = vector.broadcast %8 : vector<1x512xf32> to vector<8x512xf32>
    %11 = arith.mulf %9, %10 : vector<8x512xf32>
    %12 = arith.addf %6, %11 : vector<8x512xf32>
    %13 = vector.extract_strided_slice %0 {offsets = [0, 2], sizes = [8, 1], strides = [1, 1]} : vector<8x3xf32> to vector<8x1xf32>
    %14 = vector.extract_strided_slice %1 {offsets = [2, 0], sizes = [1, 512], strides = [1, 1]} : vector<3x512xf32> to vector<1x512xf32>
    %15 = vector.broadcast %13 : vector<8x1xf32> to vector<8x512xf32>
    %16 = vector.broadcast %14 : vector<1x512xf32> to vector<8x512xf32>
    %17 = arith.mulf %15, %16 : vector<8x512xf32>
    %18 = arith.addf %12, %17 : vector<8x512xf32>
    %c0_3 = arith.constant 0 : index
    %c0_4 = arith.constant 0 : index
    %19 = vector.load %arg3[%c0_3, %c0_4] : memref<1x512xf32, #tpu.memory_space<vmem>>, vector<1x512xf32>
    %20 = vector.broadcast %19 : vector<1x512xf32> to vector<8x512xf32>
    %21 = arith.addf %18, %20 : vector<8x512xf32>
    %cst = arith.constant 0.000000e+00 : f32
    %22 = vector.broadcast %cst : f32 to vector<8x512xf32>
    %23 = arith.maximumf %21, %22 : vector<8x512xf32>
    %24 = arith.truncf %23 : vector<8x512xf32> to vector<8x512xbf16>
    %c0_5 = arith.constant 0 : index
    %c0_6 = arith.constant 0 : index
    %25 = vector.load %arg4[%c0_5, %c0_6] : memref<512x256xbf16, #tpu.memory_space<vmem>>, vector<512x256xbf16>
    %cst_7 = arith.constant dense<0.000000e+00> : vector<8x256xf32>
    %26 = tpu.matmul %24, %25, %cst_7 {dimension_numbers = #tpu.dot_dimension_numbers<[1], [0], [0], [1], [0, 0, 1, 1], [], []>} : vector<8x512xbf16>, vector<512x256xbf16>, vector<8x256xf32> -> vector<8x256xf32>
    %c0_8 = arith.constant 0 : index
    %c0_9 = arith.constant 0 : index
    %27 = vector.load %arg5[%c0_8, %c0_9] : memref<1x256xf32, #tpu.memory_space<vmem>>, vector<1x256xf32>
    %28 = vector.broadcast %27 : vector<1x256xf32> to vector<8x256xf32>
    %29 = arith.addf %26, %28 : vector<8x256xf32>
    %cst_10 = arith.constant 0.000000e+00 : f32
    %30 = vector.broadcast %cst_10 : f32 to vector<8x256xf32>
    %31 = arith.maximumf %29, %30 : vector<8x256xf32>
    %32 = arith.truncf %31 : vector<8x256xf32> to vector<8x256xbf16>
    %c0_11 = arith.constant 0 : index
    %c0_12 = arith.constant 0 : index
    %33 = vector.load %arg6[%c0_11, %c0_12] : memref<256x128xbf16, #tpu.memory_space<vmem>>, vector<256x128xbf16>
    %cst_13 = arith.constant dense<0.000000e+00> : vector<8x128xf32>
    %34 = tpu.matmul %32, %33, %cst_13 {dimension_numbers = #tpu.dot_dimension_numbers<[1], [0], [0], [1], [0, 0, 1, 1], [], []>} : vector<8x256xbf16>, vector<256x128xbf16>, vector<8x128xf32> -> vector<8x128xf32>
    %35 = vector.extract_strided_slice %34 {offsets = [0, 0], sizes = [8, 3], strides = [1, 1]} : vector<8x128xf32> to vector<8x3xf32>
    %c0_14 = arith.constant 0 : index
    %c0_15 = arith.constant 0 : index
    %36 = vector.load %arg7[%c0_14, %c0_15] : memref<1x3xf32, #tpu.memory_space<vmem>>, vector<1x3xf32>
    %37 = vector.broadcast %36 : vector<1x3xf32> to vector<8x3xf32>
    %38 = arith.addf %35, %37 : vector<8x3xf32>
    %c0_16 = arith.constant 0 : index
    %c0_17 = arith.constant 0 : index
    %39 = vector.load %arg8[%c0_16, %c0_17] : memref<8x3xf32, #tpu.memory_space<vmem>>, vector<8x3xf32>
    tpu.vector_store %arg8[%c0_16, %c0_17], %38 {strides = array<i32>} : memref<8x3xf32, #tpu.memory_space<vmem>>, vector<8x3xf32>,
    return
  }
  func.func @transform_0(%arg0: i32) -> (i32, i32) {
    %c0_i32 = arith.constant 0 : i32
    %c0_i32_0 = arith.constant 0 : i32
    return %arg0, %c0_i32 : i32, i32
  }
  func.func @transform_1(%arg0: i32) -> (i32, i32) {
    %c0_i32 = arith.constant 0 : i32
    %c0_i32_0 = arith.constant 0 : i32
    %c0_i32_1 = arith.constant 0 : i32
    return %c0_i32, %c0_i32_0 : i32, i32
  }
  func.func @transform_2(%arg0: i32) -> (i32, i32) {
    %c0_i32 = arith.constant 0 : i32
    %c0_i32_0 = arith.constant 0 : i32
    %c0_i32_1 = arith.constant 0 : i32
    return %c0_i32, %c0_i32_0 : i32, i32
  }
  func.func @transform_3(%arg0: i32) -> (i32, i32) {
    %c0_i32 = arith.constant 0 : i32
    %c0_i32_0 = arith.constant 0 : i32
    %c0_i32_1 = arith.constant 0 : i32
    return %c0_i32, %c0_i32_0 : i32, i32
  }
  func.func @transform_4(%arg0: i32) -> (i32, i32) {
    %c0_i32 = arith.constant 0 : i32
    %c0_i32_0 = arith.constant 0 : i32
    %c0_i32_1 = arith.constant 0 : i32
    return %c0_i32, %c0_i32_0 : i32, i32
  }
  func.func @transform_5(%arg0: i32) -> (i32, i32) {
    %c0_i32 = arith.constant 0 : i32
    %c0_i32_0 = arith.constant 0 : i32
    %c0_i32_1 = arith.constant 0 : i32
    return %c0_i32, %c0_i32_0 : i32, i32
  }
  func.func @transform_6(%arg0: i32) -> (i32, i32) {
    %c0_i32 = arith.constant 0 : i32
    %c0_i32_0 = arith.constant 0 : i32
    %c0_i32_1 = arith.constant 0 : i32
    return %c0_i32, %c0_i32_0 : i32, i32
  }
  func.func @transform_7(%arg0: i32) -> (i32, i32) {
    %c0_i32 = arith.constant 0 : i32
    %c0_i32_0 = arith.constant 0 : i32
    return %arg0, %c0_i32 : i32, i32
  }
}

</mosaic_0001>

<bundles_post_ra>
// kernel: _mult_alpha_padded.1
= control target key start
LH: loop header
LB: loop body
LE: loop exit
PB: predicated region body
PF: predicated region fallthrough
CT: control target
= control target key end

     0   :  { %12 = vsyncpa [#allocation3], 0  ;;  %s1336_s0 = inlined_call_operand.vmem [shape: f32[8,3], index: 0, kind: input, shape index: {}]   ;;  %s1337_s1 = inlined_call_operand.hbm [shape: f32[3,512], index: 1, kind: input, shape index: {}]   ;;  %s1338_s2 = inlined_call_operand.vmem [shape: f32[1,512], index: 2, kind: input, shape index: {}]   ;;  %s1339_s3 = inlined_call_operand.hbm [shape: bf16[512,256], index: 3, kind: input, shape index: {}]   ;;  %s1340_s4 = inlined_call_operand.vmem [shape: f32[1,256], index: 4, kind: input, shape index: {}]   ;;  %s1341_s5 = inlined_call_operand.hbm [shape: bf16[256,128], index: 5, kind: input, shape index: {}]   ;;  %s1342_s6 = inlined_call_operand.vmem [shape: f32[1,3], index: 6, kind: input, shape index: {}]   ;;  %s1343_s7 = inlined_call_operand.vmem [shape: f32[8,3], index: 7, kind: output, shape index: {}]  }
   0x1   :  { %13 = vsyncpa [#allocation5], 0  ;;  %s1215_s24 = smov [#allocation4]   ;;  %s1145_s28 = scalar_lea.hbm %s1339_s3, 8192 }
   0x2   :  { %s33_s25 = sshll.u32 %s1215_s24, 4  ;;  %p1146_p0 = scmp.ne.s32.totalorder %s1339_s3, %s1145_s28  ;;  %s34_s25 = int_to_ptr.vmem [resolvable:$true] %s33_s25 }
   0x3   :  { %p1149_p1 = scmp.lt.u32.totalorder %s1145_s28, %s1339_s3 }
   0x5   :  { %p1151_p2 = pnand %p1149_p1, %p1146_p0 }
   0x7   :  { %1154 = shalt.err (!%p1151_p2)
}
   0x8   :  { %s1155_s10 = scalar_lea.vmem %s34_s25, 8192  ;;  %p1160_p4 = scmp.lt.s32.totalorder %s34_s25, %s34_s25 }
   0x9   :  { %p1156_p3 = scmp.ne.s32.totalorder %s34_s25, %s1155_s10  ;;  %p1161_p5 = scmp.lt.s32.totalorder %s1155_s10, %s1155_s10 }
   0xb   :  { %p1162_p6 = por %p1161_p5, %p1160_p4 }
   0xd   :  { %p1163_p7 = pnand %p1162_p6, %p1156_p3 }
   0xf   :  { %1166 = shalt.err (!%p1163_p7)
}
  0x10   :  { %s1216_s11 = smov 128   ;;  %s1217_s12 = smov 8  }
  0x11   :  { %39 = dma.hbm_to_vmem [thread:$0]  %s1339_s3, 8192, %s34_s25, [#allocation5], %s1216_s11, %s1216_s11, %s1217_s12  }
  0x12   :  { %s1218_s15 = smov [#allocation2]   ;;  %s1219_s17 = smov [#allocation6]  }
  0x13   :  { %s22_s16 = sshll.u32 %s1218_s15, 4  ;;  %s47_s18 = sshll.u32 %s1219_s17, 4  ;;  %s23_s16 = int_to_ptr.vmem [resolvable:$true] %s22_s16  ;;  %s48_s18 = int_to_ptr.vmem [resolvable:$true] %s47_s18 }
  0x14   :  { %s1167_s21 = scalar_lea.hbm %s1337_s1, 256 }
  0x15   :  { %p1168_p8 = scmp.ne.s32.totalorder %s1337_s1, %s1167_s21  ;;  %p1171_p9 = scmp.lt.u32.totalorder %s1167_s21, %s1337_s1 }
  0x17   :  { %p1173_p10 = pnand %p1171_p9, %p1168_p8 }
  0x19   :  { %1176 = shalt.err (!%p1173_p10)
}
  0x1a   :  { %s1177_s3 = scalar_lea.vmem %s23_s16, 256  ;;  %p1182_p12 = scmp.lt.s32.totalorder %s23_s16, %s23_s16 }
  0x1b   :  { %p1178_p11 = scmp.ne.s32.totalorder %s23_s16, %s1177_s3  ;;  %p1183_p13 = scmp.lt.s32.totalorder %s1177_s3, %s1177_s3 }
  0x1d   :  { %p1184_p0 = por %p1183_p13, %p1182_p12 }
  0x1f   :  { %p1185_p1 = pnand %p1184_p0, %p1178_p11 }
  0x21   :  { %1188 = shalt.err (!%p1185_p1)
}
  0x22   :  { %25 = dma.hbm_to_vmem [thread:$0]  %s1337_s1, 256, %s23_s16, [#allocation3]  }
  0x23   :  { %s1189_s30 = scalar_lea.hbm %s1341_s5, 2048 }
  0x24   :  { %p1190_p2 = scmp.ne.s32.totalorder %s1341_s5, %s1189_s30  ;;  %p1193_p3 = scmp.lt.u32.totalorder %s1189_s30, %s1341_s5 }
  0x26   :  { %p1195_p4 = pnand %p1193_p3, %p1190_p2 }
  0x28   :  { %1198 = shalt.err (!%p1195_p4)
}
  0x29   :  { %s1199_s12 = scalar_lea.vmem %s48_s18, 2048  ;;  %p1204_p6 = scmp.lt.s32.totalorder %s48_s18, %s48_s18 }
  0x2a   :  { %p1200_p5 = scmp.ne.s32.totalorder %s48_s18, %s1199_s12  ;;  %p1205_p7 = scmp.lt.s32.totalorder %s1199_s12, %s1199_s12 }
  0x2c   :  { %p1206_p8 = por %p1205_p7, %p1204_p6 }
  0x2e   :  { %p1207_p9 = pnand %p1206_p8, %p1200_p5 }
  0x30   :  { %1210 = shalt.err (!%p1207_p9)
}
  0x31   :  { %s1220_s1 = smov 64   ;;  %s1221_s13 = smov 4  }
  0x32   :  { %53 = dma.hbm_to_vmem [thread:$0]  %s1341_s5, 2048, %s48_s18, [#allocation5], %s1220_s1, %s1220_s1, %s1221_s13  }
  0x33   :  { %1211 = dma.done.wait [#allocation3], 256  }
  0x34   :  { %1212 = vsyncadd [#allocation3], 4294967040 }
  0x35   :  { %1213 = dma.done.wait [#allocation5], 10240  }
  0x36   :  { %1214 = vsyncadd [#allocation5], 4294957056  ;;  %v1222_v0 = vmov 0   ;;  %v1223_v1 = vmov 2   ;;  %v66_v2 = vld [vmem:[%s1336_s0] sm:$0xff]  ;;  %v1224_v9 = vmov 1  }
  0x37   :  { %1029 = vset.pattern.permute.xlu0 %v1222_v0  ;;  %1031 = vset.pattern.permute.xlu1 %v1223_v1  ;;  %v1033_v3 = vld [vmem:[#allocation4 + $0x4] ss:$8 sps:$4 sm:$0xff]   ;;  %v1037_v5 = vld [vmem:[#allocation4] ss:$8 sps:$4 sm:$0xff]   ;;  %v1039_v7 = vld [vmem:[#allocation4 + $0x14] ss:$8 sps:$4 sm:$0xff]  }
  0x38   :  { %71 = vperm.xlu0 %1029, %v66_v2   ;;  %165 = vperm.xlu1 %1031, %v66_v2   ;;  %v1035_v4 = vld [vmem:[#allocation4 + $0x104] ss:$8 sps:$4 sm:$0xff]   ;;  %v1038_v6 = vld [vmem:[#allocation4 + $0x100] ss:$8 sps:$4 sm:$0xff]   ;;  %v1041_v8 = vld [vmem:[#allocation4 + $0x114] ss:$8 sps:$4 sm:$0xff]  }
  0x39   :  { %642 = vmatprep.subr.bf16.mxu1 %v1033_v3  ;;  %683 = vmatprep.subr.bf16.mxu0 %v1035_v4  ;;  %v1043_v10 = vld [vmem:[#allocation4 + $0x10] ss:$8 sps:$4 sm:$0xff]   ;;  %v1045_v12 = vld [vmem:[#allocation4 + $0x24] ss:$8 sps:$4 sm:$0xff]   ;;  %v1049_v14 = vld [vmem:[#allocation4 + $0x20] ss:$8 sps:$4 sm:$0xff]  }
  0x3a   :  { %643 = vmatpush1.bf16.msra.mxu1 %v1037_v5  ;;  %684 = vmatpush1.bf16.msra.mxu0 %v1038_v6  ;;  %v1044_v11 = vld [vmem:[#allocation4 + $0x110] ss:$8 sps:$4 sm:$0xff]   ;;  %v1047_v13 = vld [vmem:[#allocation4 + $0x124] ss:$8 sps:$4 sm:$0xff]   ;;  %v1050_v15 = vld [vmem:[#allocation4 + $0x120] ss:$8 sps:$4 sm:$0xff]   ;;  %v76_v5 = vlaneseq }
  0x3b   :  { %644 = vmatprep.subr.bf16.mxu1 %v1039_v7  ;;  %685 = vmatprep.subr.bf16.mxu0 %v1041_v8  ;;  %v1051_v16 = vld [vmem:[#allocation4 + $0x34] ss:$8 sps:$4 sm:$0xff]   ;;  %v1055_v18 = vld [vmem:[#allocation4 + $0x30] ss:$8 sps:$4 sm:$0xff]   ;;  %v1057_v20 = vld [vmem:[#allocation4 + $0x44] ss:$8 sps:$4 sm:$0xff]  }
  0x3c   :  { %1030 = vset.pattern.permute.xlu0 %v1224_v9  ;;  %v1053_v17 = vld [vmem:[#allocation4 + $0x134] ss:$8 sps:$4 sm:$0xff]   ;;  %v1056_v19 = vld [vmem:[#allocation4 + $0x130] ss:$8 sps:$4 sm:$0xff]   ;;  %v1059_v21 = vld [vmem:[#allocation4 + $0x144] ss:$8 sps:$4 sm:$0xff]  }
  0x3d   :  { %117 = vperm.xlu0 %1030, %v66_v2   ;;  %v1061_v22 = vld [vmem:[#allocation4 + $0x40] ss:$8 sps:$4 sm:$0xff]   ;;  %v1063_v24 = vld [vmem:[#allocation4 + $0x54] ss:$8 sps:$4 sm:$0xff]   ;;  %v1067_v26 = vld [vmem:[#allocation4 + $0x50] ss:$8 sps:$4 sm:$0xff]  }
  0x3e   :  { %645 = vmatpush1.bf16.msra.mxu1 %v1043_v10  ;;  %686 = vmatpush1.bf16.msra.mxu0 %v1044_v11  ;;  %v1062_v23 = vld [vmem:[#allocation4 + $0x140] ss:$8 sps:$4 sm:$0xff]   ;;  %v1065_v25 = vld [vmem:[#allocation4 + $0x154] ss:$8 sps:$4 sm:$0xff]   ;;  %v1068_v27 = vld [vmem:[#allocation4 + $0x150] ss:$8 sps:$4 sm:$0xff]  }
  0x3f   :  { %646 = vmatprep.subr.bf16.mxu1 %v1045_v12  ;;  %687 = vmatprep.subr.bf16.mxu0 %v1047_v13  ;;  %v1069_v28 = vld [vmem:[#allocation4 + $0x64] ss:$8 sps:$4 sm:$0xff]   ;;  %v1073_v30 = vld [vmem:[#allocation4 + $0x60] ss:$8 sps:$4 sm:$0xff]   ;;  %v1075_v32 = vld [vmem:[#allocation4 + $0x74] ss:$8 sps:$4 sm:$0xff]  }
  0x40   :  { %v1071_v29 = vld [vmem:[#allocation4 + $0x164] ss:$8 sps:$4 sm:$0xff]   ;;  %v1074_v31 = vld [vmem:[#allocation4 + $0x160] ss:$8 sps:$4 sm:$0xff]   ;;  %v1077_v33 = vld [vmem:[#allocation4 + $0x174] ss:$8 sps:$4 sm:$0xff]  }
  0x41   :  { %1032 = vset.pattern.permute.xlu0 %v1223_v1  ;;  %v1079_v34 = vld [vmem:[#allocation4 + $0x70] ss:$8 sps:$4 sm:$0xff]   ;;  %v1081_v36 = vld [vmem:[#allocation4 + $0x84] ss:$8 sps:$4 sm:$0xff]   ;;  %v1085_v38 = vld [vmem:[#allocation4 + $0x80] ss:$8 sps:$4 sm:$0xff]  }
  0x42   :  { %647 = vmatpush1.bf16.msra.mxu1 %v1049_v14  ;;  %688 = vmatpush1.bf16.msra.mxu0 %v1050_v15  ;;  %v1080_v35 = vld [vmem:[#allocation4 + $0x170] ss:$8 sps:$4 sm:$0xff]   ;;  %v1083_v37 = vld [vmem:[#allocation4 + $0x184] ss:$8 sps:$4 sm:$0xff]   ;;  %v1086_v39 = vld [vmem:[#allocation4 + $0x180] ss:$8 sps:$4 sm:$0xff]  }
  0x43   :  { %648 = vmatprep.subr.bf16.mxu1 %v1051_v16  ;;  %689 = vmatprep.subr.bf16.mxu0 %v1053_v17  ;;  %v1087_v40 = vld [vmem:[#allocation4 + $0x94] ss:$8 sps:$4 sm:$0xff]   ;;  %v1091_v42 = vld [vmem:[#allocation4 + $0x90] ss:$8 sps:$4 sm:$0xff]   ;;  %v1093_v44 = vld [vmem:[#allocation4 + $0xa4] ss:$8 sps:$4 sm:$0xff]  }
  0x44   :  { %v1089_v41 = vld [vmem:[#allocation4 + $0x194] ss:$8 sps:$4 sm:$0xff]   ;;  %v1092_v43 = vld [vmem:[#allocation4 + $0x190] ss:$8 sps:$4 sm:$0xff]   ;;  %v1095_v45 = vld [vmem:[#allocation4 + $0x1a4] ss:$8 sps:$4 sm:$0xff]  }
  0x45   :  { %v1097_v46 = vld [vmem:[#allocation4 + $0xa0] ss:$8 sps:$4 sm:$0xff]   ;;  %v1099_v48 = vld [vmem:[#allocation4 + $0xb4] ss:$8 sps:$4 sm:$0xff]   ;;  %v1103_v50 = vld [vmem:[#allocation4 + $0xb0] ss:$8 sps:$4 sm:$0xff]  }
  0x46   :  { %649 = vmatpush1.bf16.msra.mxu1 %v1055_v18  ;;  %690 = vmatpush1.bf16.msra.mxu0 %v1056_v19  ;;  %v1098_v47 = vld [vmem:[#allocation4 + $0x1a0] ss:$8 sps:$4 sm:$0xff]   ;;  %v1101_v49 = vld [vmem:[#allocation4 + $0x1b4] ss:$8 sps:$4 sm:$0xff]   ;;  %v1104_v51 = vld [vmem:[#allocation4 + $0x1b0] ss:$8 sps:$4 sm:$0xff]  }
  0x47   :  { %650 = vmatprep.subr.bf16.mxu1 %v1057_v20  ;;  %691 = vmatprep.subr.bf16.mxu0 %v1059_v21  ;;  %v1105_v52 = vld [vmem:[#allocation4 + $0xc4] ss:$8 sps:$4 sm:$0xff]   ;;  %v1109_v54 = vld [vmem:[#allocation4 + $0xc0] ss:$8 sps:$4 sm:$0xff]   ;;  %v1111_v56 = vld [vmem:[#allocation4 + $0xd4] ss:$8 sps:$4 sm:$0xff]  }
  0x48   :  { %v1107_v53 = vld [vmem:[#allocation4 + $0x1c4] ss:$8 sps:$4 sm:$0xff]   ;;  %v1110_v55 = vld [vmem:[#allocation4 + $0x1c0] ss:$8 sps:$4 sm:$0xff]   ;;  %v1113_v57 = vld [vmem:[#allocation4 + $0x1d4] ss:$8 sps:$4 sm:$0xff]  }
  0x49   :  { %v1115_v58 = vld [vmem:[#allocation4 + $0xd0] ss:$8 sps:$4 sm:$0xff]   ;;  %v1117_v60 = vld [vmem:[#allocation4 + $0xe4] ss:$8 sps:$4 sm:$0xff]   ;;  %v1121_v62 = vld [vmem:[#allocation4 + $0xe0] ss:$8 sps:$4 sm:$0xff]  }
  0x4a   :  { %651 = vmatpush1.bf16.msra.mxu1 %v1061_v22  ;;  %692 = vmatpush1.bf16.msra.mxu0 %v1062_v23  ;;  %v1116_v59 = vld [vmem:[#allocation4 + $0x1d0] ss:$8 sps:$4 sm:$0xff]   ;;  %v1119_v61 = vld [vmem:[#allocation4 + $0x1e4] ss:$8 sps:$4 sm:$0xff]   ;;  %v1122_v63 = vld [vmem:[#allocation4 + $0x1e0] ss:$8 sps:$4 sm:$0xff]  }
  0x4b   :  { %652 = vmatprep.subr.bf16.mxu1 %v1063_v24  ;;  %693 = vmatprep.subr.bf16.mxu0 %v1065_v25  ;;  %v1123_v0 = vld [vmem:[#allocation4 + $0xf4] ss:$8 sps:$4 sm:$0xff]   ;;  %v1127_v2 = vld [vmem:[#allocation4 + $0xf0] ss:$8 sps:$4 sm:$0xff]   ;;  %v1129_v4 = vld [vmem:[#allocation6 + $0x40] sm:$0xff]   ;;  %v77_v6 = vshrl.u32 %v76_v5, 7 }
  0x4c   :  { %v1125_v1 = vld [vmem:[#allocation4 + $0x1f4] ss:$8 sps:$4 sm:$0xff]   ;;  %v1128_v3 = vld [vmem:[#allocation4 + $0x1f0] ss:$8 sps:$4 sm:$0xff]   ;;  %vm904_vm0 = vcmask 23552  }
  0x4d   :  { %v1304_v7 = vsub.s32 0, %v77_v6  ;;  %v82_v8 = vsub.s32 4, %v77_v6  ;;  %v67_v9 = vld [vmem:[#allocation2] sm:$0x77]  ;;  %v68_v10 = vld [vmem:[#allocation2 + $0x8] sm:$0x77] }
  0x4e   :  { %653 = vmatpush1.bf16.msra.mxu1 %v1067_v26  ;;  %694 = vmatpush1.bf16.msra.mxu0 %v1068_v27  ;;  %v170_v11 = vsub.s32 2, %v77_v6  ;;  %v174_v12 = vsub.s32 6, %v77_v6  ;;  %v1306_v13 = vsub.s32 1, %v77_v6  ;;  %v126_v14 = vsub.s32 5, %v77_v6 }
  0x4f   :  { %654 = vmatprep.subr.bf16.mxu1 %v1069_v28  ;;  %695 = vmatprep.subr.bf16.mxu0 %v1071_v29  ;;  %v79_v15 = vrot.slane %v67_v9, %v1304_v7  ;;  %v83_v16 = vrot.slane %v67_v9, %v82_v8  ;;  %v87_v17 = vrot.slane %v68_v10, %v1304_v7 }
  0x50   :  { %v91_v18 = vrot.slane %v68_v10, %v82_v8  ;;  %v171_v19 = vrot.slane %v67_v9, %v170_v11  ;;  %v175_v20 = vrot.slane %v67_v9, %v174_v12  ;;  %v179_v21 = vrot.slane %v68_v10, %v170_v11 }
  0x51   :  { %v183_v22 = vrot.slane %v68_v10, %v174_v12  ;;  %v123_v23 = vrot.slane %v67_v9, %v1306_v13  ;;  %v127_v24 = vrot.slane %v67_v9, %v126_v14  ;;  %v131_v25 = vrot.slane %v68_v10, %v1306_v13 }
  0x52   :  { %655 = vmatpush1.bf16.msra.mxu1 %v1073_v30  ;;  %696 = vmatpush1.bf16.msra.mxu0 %v1074_v31  ;;  %v135_v26 = vrot.slane %v68_v10, %v126_v14  ;;  %v99_v27 = vrot.slane %v79_v15, %v1304_v7  ;;  %v103_v28 = vrot.slane %v83_v16, %v1304_v7 }
  0x53   :  { %656 = vmatprep.subr.bf16.mxu1 %v1075_v32  ;;  %697 = vmatprep.subr.bf16.mxu0 %v1077_v33  ;;  %v107_v29 = vrot.slane %v87_v17, %v1304_v7  ;;  %v111_v30 = vrot.slane %v91_v18, %v1304_v7  ;;  %v191_v32 = vrot.slane %v171_v19, %v170_v11  ;;  %v1130_v18 = vld [vmem:[#allocation6] sm:$0xff]   ;;  %v1131_v19 = vld [vmem:[#allocation6 + $0x48] sm:$0xff]  }
  0x54   :  { %v195_v33 = vrot.slane %v175_v20, %v170_v11  ;;  %v1132_v20 = vld [vmem:[#allocation6 + $0x8] sm:$0xff]  }
  0x56   :  { %657 = vmatpush1.bf16.msra.mxu1 %v1079_v34  ;;  %698 = vmatpush1.bf16.msra.mxu0 %v1080_v35  ;;  %v199_v34 = vrot.slane %v179_v21, %v170_v11  ;;  %v203_v35 = vrot.slane %v183_v22, %v170_v11  ;;  %v1133_v21 = vld [vmem:[#allocation6 + $0x50] sm:$0xff]  }
  0x57   :  { %658 = vmatprep.subr.bf16.mxu1 %v1081_v36  ;;  %699 = vmatprep.subr.bf16.mxu0 %v1083_v37  ;;  %v143_v36 = vrot.slane %v123_v23, %v1306_v13  ;;  %v147_v37 = vrot.slane %v127_v24, %v1306_v13  ;;  %v1134_v22 = vld [vmem:[#allocation6 + $0x10] sm:$0xff]   ;;  %v1135_v23 = vld [vmem:[#allocation6 + $0x58] sm:$0xff]  }
  0x58   :  { %v1136_v24 = vld [vmem:[#allocation6 + $0x18] sm:$0xff]  }
  0x5a   :  { %659 = vmatpush1.bf16.msra.mxu1 %v1085_v38  ;;  %700 = vmatpush1.bf16.msra.mxu0 %v1086_v39  ;;  %v151_v38 = vrot.slane %v131_v25, %v1306_v13  ;;  %v155_v39 = vrot.slane %v135_v26, %v1306_v13  ;;  %v1137_v25 = vld [vmem:[#allocation6 + $0x60] sm:$0xff]  }
  0x5b   :  { %660 = vmatprep.subr.bf16.mxu1 %v1087_v40  ;;  %701 = vmatprep.subr.bf16.mxu0 %v1089_v41  ;;  %v228_v41 = vsub.s32 3, %v77_v6  ;;  %v1138_v26 = vld [vmem:[#allocation6 + $0x20] sm:$0xff]  }
  0x5e   :  { %661 = vmatpush1.bf16.msra.mxu1 %v1091_v42  ;;  %702 = vmatpush1.bf16.msra.mxu0 %v1092_v43 }
  0x5f   :  { %662 = vmatprep.subr.bf16.mxu1 %v1093_v44  ;;  %703 = vmatprep.subr.bf16.mxu0 %v1095_v45 }
  0x62   :  { %663 = vmatpush1.bf16.msra.mxu1 %v1097_v46  ;;  %704 = vmatpush1.bf16.msra.mxu0 %v1098_v47  ;;  %v212_v46 = vld [vmem:[%s1338_s2] sm:$0xf] }
  0x63   :  { %664 = vmatprep.subr.bf16.mxu1 %v1099_v48  ;;  %705 = vmatprep.subr.bf16.mxu0 %v1101_v49 }
  0x66   :  { %665 = vmatpush1.bf16.msra.mxu1 %v1103_v50  ;;  %706 = vmatpush1.bf16.msra.mxu0 %v1104_v51 }
  0x67   :  { %666 = vmatprep.subr.bf16.mxu1 %v1105_v52  ;;  %707 = vmatprep.subr.bf16.mxu0 %v1107_v53 }
  0x6a   :  { %667 = vmatpush1.bf16.msra.mxu1 %v1109_v54  ;;  %708 = vmatpush1.bf16.msra.mxu0 %v1110_v55 }
  0x6b   :  { %668 = vmatprep.subr.bf16.mxu1 %v1111_v56  ;;  %709 = vmatprep.subr.bf16.mxu0 %v1113_v57  ;;  %v221_v56 = vrot.slane %v212_v46, %v1306_v13  ;;  %v229_v57 = vrot.slane %v212_v46, %v228_v41 }
  0x6e   :  { %669 = vmatpush1.bf16.msra.mxu1 %v1115_v58  ;;  %710 = vmatpush1.bf16.msra.mxu0 %v1116_v59  ;;  %v217_v58 = vrot.slane %v212_v46, %v1304_v7  ;;  %v225_v59 = vrot.slane %v212_v46, %v170_v11 }
  0x6f   :  { %670 = vmatprep.subr.bf16.mxu1 %v1117_v60  ;;  %711 = vmatprep.subr.bf16.mxu0 %v1119_v61 }
  0x72   :  { %671 = vmatpush1.bf16.msra.mxu1 %v1121_v62  ;;  %712 = vmatpush1.bf16.msra.mxu0 %v1122_v63 }
  0x73   :  { %672 = vmatprep.subr.bf16.mxu1 %v1123_v0  ;;  %713 = vmatprep.subr.bf16.mxu0 %v1125_v1 }
  0x76   :  { %673 = vmatpush1.bf16.msra.mxu1 %v1127_v2  ;;  %714 = vmatpush1.bf16.msra.mxu0 %v1128_v3 }
  0x77   :  { %993 = vmatprep.subr.bf16.mxu1 %v1129_v4 }
  0xb7   :  { %v72_v31 = vpop.permute.xlu0 %71  ;;  %v166_v40 = vpop.permute.xlu1 %165 }
  0xb8   :  { %v112_v42 = vmul.f32 %v99_v27, %v72_v31  ;;  %v113_v43 = vmul.f32 %v103_v28, %v72_v31  ;;  %v114_v44 = vmul.f32 %v107_v29, %v72_v31  ;;  %v115_v45 = vmul.f32 %v111_v30, %v72_v31  ;;  %v1139_v27 = vld [vmem:[#allocation6 + $0x68] sm:$0xff]   ;;  %v1141_v29 = vld [vmem:[#allocation6 + $0x70] sm:$0xff]   ;;  %v1143_v31 = vld [vmem:[#allocation6 + $0x78] sm:$0xff]  }
  0xb9   :  { %v204_v48 = vmul.f32 %v191_v32, %v166_v40  ;;  %v205_v49 = vmul.f32 %v195_v33, %v166_v40  ;;  %v206_v50 = vmul.f32 %v199_v34, %v166_v40  ;;  %v207_v51 = vmul.f32 %v203_v35, %v166_v40  ;;  %v1140_v28 = vld [vmem:[#allocation6 + $0x28] sm:$0xff]   ;;  %v1142_v30 = vld [vmem:[#allocation6 + $0x30] sm:$0xff]   ;;  %v1144_v32 = vld [vmem:[#allocation6 + $0x38] sm:$0xff]  }
  0xba   :  { %v310_v33 = vld [vmem:[%s1340_s4] sm:$0x3] }
  0xbb   :  { %v315_v34 = vrot.slane %v310_v33, %v1304_v7  ;;  %v319_v35 = vrot.slane %v310_v33, %v1306_v13 }
  0xbc   :  { %v118_v47 = vpop.permute.xlu0 %117 }
  0xbd   :  { %v156_v52 = vmul.f32 %v143_v36, %v118_v47  ;;  %v157_v53 = vmul.f32 %v147_v37, %v118_v47  ;;  %v158_v54 = vmul.f32 %v151_v38, %v118_v47  ;;  %v159_v55 = vmul.f32 %v155_v39, %v118_v47 }
  0xbf   :  { %v160_v60 = vadd.f32 %v156_v52, %v112_v42  ;;  %v162_v61 = vadd.f32 %v158_v54, %v114_v44  ;;  %v161_v62 = vadd.f32 %v157_v53, %v113_v43  ;;  %v163_v63 = vadd.f32 %v159_v55, %v115_v45  ;;  %v992_v52 = vld [vmem:[%s1342_s6] ss:$0 sm:$0xff] }
  0xc1   :  { %v208_v0 = vadd.f32 %v204_v48, %v160_v60  ;;  %v210_v1 = vadd.f32 %v206_v50, %v162_v61  ;;  %v209_v2 = vadd.f32 %v205_v49, %v161_v62  ;;  %v211_v3 = vadd.f32 %v207_v51, %v163_v63 }
  0xc3   :  { %v235_v4 = vadd.f32 %v221_v56, %v209_v2  ;;  %v237_v5 = vadd.f32 %v229_v57, %v211_v3  ;;  %v234_v6 = vadd.f32 %v217_v58, %v208_v0  ;;  %v236_v8 = vadd.f32 %v225_v59, %v210_v1 }
  0xc5   :  { %v239_v9 = vmax.f32 %v235_v4, 0.0  ;;  %v241_v10 = vmax.f32 %v237_v5, 0.0  ;;  %v238_v12 = vmax.f32 %v234_v6, 0.0  ;;  %v240_v14 = vmax.f32 %v236_v8, 0.0 }
  0xc7   :  { %v243_v15 = vpack.c.bf16 %v239_v9, %v239_v9  ;;  %v245_v16 = vpack.c.bf16 %v241_v10, %v241_v10  ;;  %v242_v17 = vpack.c.bf16 %v238_v12, %v238_v12  ;;  %v244_v11 = vpack.c.bf16 %v240_v14, %v240_v14 }
  0xc9   :  { %674 = vmatprep.mubr.bf16.mxu1 %v243_v15  ;;  %715 = vmatprep.mubr.bf16.mxu0 %v245_v16 }
  0xca   :  { %675 = vmatmul.mubr.bf16.vlgmr.msra.gmra.mrb[0].mxu1 %v242_v17  ;;  %716 = vmatmul.mubr.bf16.vlgmr.msra.gmra.mrb[0].mxu0 %v244_v11 }
  0xcb   :  { %994 = vmatpush3.bf16.msra.mxu1 %v1130_v18 }
  0xcc   :  { %995 = vmatprep.subr.bf16.mxu1 %v1131_v19 }
  0xcf   :  { %996 = vmatpush3.bf16.msra.mxu1 %v1132_v20 }
  0xd0   :  { %997 = vmatprep.subr.bf16.mxu1 %v1133_v21 }
  0xd3   :  { %998 = vmatpush3.bf16.msra.mxu1 %v1134_v22 }
  0xd4   :  { %999 = vmatprep.subr.bf16.mxu1 %v1135_v23 }
  0xd7   :  { %1000 = vmatpush3.bf16.msra.mxu1 %v1136_v24 }
  0xd8   :  { %1001 = vmatprep.subr.bf16.mxu1 %v1137_v25 }
  0xdb   :  { %1002 = vmatpush3.bf16.msra.mxu1 %v1138_v26 }
  0xdc   :  { %1003 = vmatprep.subr.bf16.mxu1 %v1139_v27 }
  0xdf   :  { %1004 = vmatpush3.bf16.msra.mxu1 %v1140_v28 }
  0xe0   :  { %1005 = vmatprep.subr.bf16.mxu1 %v1141_v29 }
  0xe3   :  { %1006 = vmatpush3.bf16.msra.mxu1 %v1142_v30 }
  0xe4   :  { %1007 = vmatprep.subr.bf16.mxu1 %v1143_v31 }
  0xe7   :  { %1008 = vmatpush3.bf16.msra.mxu1 %v1144_v32 }
 0x19d   :  { %v676_v36 = vpop.f32.mrb[0].mxu1  ;;  %v717_v37 = vpop.f32.mrb[0].mxu0 }
 0x19e   :  { %v677_v38 = vadd.f32 %v676_v36, %v315_v34  ;;  %v678_v39 = vpop.f32.mrb[1].mxu1  ;;  %v719_v40 = vpop.f32.mrb[1].mxu0 }
 0x19f   :  { %v679_v41 = vadd.f32 %v678_v39, %v319_v35  ;;  %v680_v42 = vpop.f32.mrb[2].mxu1  ;;  %v721_v43 = vpop.f32.mrb[2].mxu0 }
 0x1a0   :  { %v718_v44 = vadd.f32 %v717_v37, %v677_v38  ;;  %v681_v45 = vpop.f32.mrb[3].mxu1  ;;  %v722_v46 = vpop.f32.mrb[3].mxu0 }
 0x1a1   :  { %v720_v47 = vadd.f32 %v719_v40, %v679_v41 }
 0x1a2   :  { %v724_v48 = vmax.f32 %v718_v44, 0.0 }
 0x1a3   :  { %v725_v49 = vmax.f32 %v720_v47, 0.0 }
 0x1a4   :  { %v726_v51 = vpack.c.bf16 %v724_v48, %v724_v48 }
 0x1a5   :  { %v727_v50 = vpack.c.bf16 %v725_v49, %v725_v49 }
 0x1a7   :  { %888 = vmatprep.mubr.bf16.mxu1 %v727_v50 }
 0x1a8   :  { %889 = vmatmul.mubr.bf16.vlgmr.msra.gmra.mrb[4].mxu1 %v726_v51 }
 0x27b   :  { %v1009_v7 = vpop.f32.mrb[4].mxu1 }
 0x27c   :  { %v1010_v13 = vpop.f32.mrb[5].mxu1 }
 0x27d   :  { %v1011_v53 = vadd.f32 %v1010_v13, %v1009_v7  ;;  %v1012_v54 = vpop.f32.mrb[6].mxu1 }
 0x27e   :  { %v1013_v55 = vpop.f32.mrb[7].mxu1 }
 0x27f   :  { %v903_v56 = vadd.f32 %v1011_v53, %v992_v52 }
 0x281   :  { %905 = vst.msk [vmem:[%s1343_s7] sm:$0xff] %vm904_vm0, %v903_v56 }
 0x282   :  { %910 = vsyncpa [#allocation3], 1 }
 0x283   :  { %911 = vsyncpa [#allocation5], 1 }

</bundles_post_ra>
